<compile_context>
chip_gen: v7x
topology: tpu7x:2x2x1
jax: 0.10.0
libtpu: 0.0.40
codegen_flags: <defaults>
</compile_context>

<pallas_src>
import functools

import jax
import jax.numpy as jnp
import numpy as np
from jax import lax
from jax.experimental import pallas as pl
from jax.experimental.pallas import tpu as pltpu


# ---------------------------------------------------------------------------
# Kernel 1: node-embedding linear + adjacency A + S = softmax(relu(A), axis=1)
# ---------------------------------------------------------------------------
def adj_kernel(emb_ref, lwt_ref, lb_ref, a_ref, s_ref):
    emb = emb_ref[...]                                    # [N, E] f32
    lwt = lwt_ref[...]                                    # [E, E]  (= W.T, pre-transposed in wrapper)
    lb = lb_ref[...]                                      # [1, E]

    # torch.nn.Linear: y = x @ W.T + b   (W.T supplied -> no in-kernel transpose)
    e = jnp.dot(emb, lwt, preferred_element_type=jnp.float32) + lb        # [N, E]

    # A = e @ e.T without materializing the transpose: contract the E axes.
    a = lax.dot_general(e, e, dimension_numbers=(((1,), (1,)), ((), ())),
                        preferred_element_type=jnp.float32)                # [N, N]
    a_ref[...] = a

    # S = softmax(relu(A), dim=1). Row max/sum stay f32; the denominator uses
    # the EUP approximate reciprocal (runs on a free slot next to VPU work).
    ar = jnp.maximum(a, 0.0)
    m = jnp.max(ar, axis=1, keepdims=True)
    ex = jnp.exp(ar - m)
    s_ref[...] = ex * pl.reciprocal(jnp.sum(ex, axis=1, keepdims=True), approx=True)


# ---------------------------------------------------------------------------
# Kernel 2: graph convolution for all batches at once.
#   x laid out as [N, B*C_in]; Chebyshev recursion runs on activations:
#     z0 = x, z1 = S @ x, zk = 2 * S @ z_{k-1} - z_{k-2}
#   Channel contraction uses a block-diagonal weight [B*C_in, B*C_out] per k, so
#   the output is accumulated and stored as one lane-dense [N, B*C_out] slab.
# ---------------------------------------------------------------------------
def gconv_kernel(s_ref, x_ref, w_ref, b_ref, o_ref, *, cheb_k, mxu_dtype):
    s = s_ref[...].astype(mxu_dtype)                      # [N, N]
    x = x_ref[...]                                        # [N, B*C_in] f32

    # k = 0: T_0 = I, so T_0 @ x == x  (identity support never materialized).
    acc = jnp.dot(x.astype(mxu_dtype), w_ref[0], preferred_element_type=jnp.float32)

    z_prev = x
    if cheb_k > 1:
        z_cur = jnp.dot(s, x.astype(mxu_dtype), preferred_element_type=jnp.float32)
        acc = acc + jnp.dot(z_cur.astype(mxu_dtype), w_ref[1],
                            preferred_element_type=jnp.float32)
        for k in range(2, cheb_k):                        # static, unrolled
            z_next = 2.0 * jnp.dot(s, z_cur.astype(mxu_dtype),
                                   preferred_element_type=jnp.float32) - z_prev
            acc = acc + jnp.dot(z_next.astype(mxu_dtype), w_ref[k],
                                preferred_element_type=jnp.float32)
            z_prev, z_cur = z_cur, z_next

    o_ref[...] = acc + b_ref[...]                         # lane-dense full-width store


# ---------------------------------------------------------------------------
# Wrapper
# ---------------------------------------------------------------------------
def sagc_forward(x, node_embeddings, lin_w, lin_b, cheb_w, cheb_b, cheb_k,
                 *, mxu_dtype=jnp.float32):
    B, N, C_in = x.shape
    E = node_embeddings.shape[1]
    C_out = cheb_w.shape[2]

    # Whole-array, single-buffered VMEM residency (no grid -> no double-buffering).
    vmem = pl.BlockSpec(memory_space=pltpu.MemorySpace.VMEM)

    # ---- Kernel 1: adjacency + row softmax ---------------------------------
    a, s = pl.pallas_call(
        adj_kernel,
        out_shape=(jax.ShapeDtypeStruct((N, N), jnp.float32),
                   jax.ShapeDtypeStruct((N, N), jnp.float32)),
        in_specs=[vmem, vmem, vmem],
        out_specs=(vmem, vmem),
    )(node_embeddings, lin_w.T, lin_b.reshape(1, E))

    # ---- Layout plumbing (wrapper-side, outside the kernels) ---------------
    # x: [B, N, C_in] -> [N, B*C_in]   (batch flattened into the lane dim)
    x2 = jnp.transpose(x, (1, 0, 2)).reshape(N, B * C_in)
    # Block-diagonal Chebyshev weights: w_bd[k] = blockdiag(W_k, ..., W_k) (B copies)
    # -> [K, B*C_in, B*C_out]; one matmul per k then covers every batch element.
    eye_b = jnp.eye(B, dtype=cheb_w.dtype)
    w_bd = jnp.einsum('pq,kio->kpiqo', eye_b, cheb_w).reshape(
        cheb_k, B * C_in, B * C_out).astype(mxu_dtype)
    bias2 = jnp.tile(cheb_b, (B,)).reshape(1, B * C_out).astype(jnp.float32)

    # ---- Kernel 2: Chebyshev recursion on activations + channel contraction
    out2 = pl.pallas_call(
        functools.partial(gconv_kernel, cheb_k=cheb_k, mxu_dtype=mxu_dtype),
        out_shape=jax.ShapeDtypeStruct((N, B * C_out), jnp.float32),
        in_specs=[vmem, vmem, vmem, vmem],
        out_specs=vmem,
    )(s, x2, w_bd, bias2)

    # [N, B*C_out] -> [B, N, C_out]
    x_gconv = jnp.transpose(out2.reshape(N, B, C_out), (1, 0, 2))
    return x_gconv, a


# ---------------------------------------------------------------------------
# Pure-JAX reference (mirrors the PyTorch forward exactly)
# ---------------------------------------------------------------------------
def sagc_reference(x, node_embeddings, lin_w, lin_b, cheb_w, cheb_b, cheb_k):
    n = node_embeddings.shape[0]
    e = node_embeddings @ lin_w.T + lin_b
    a = e @ e.T
    s = jax.nn.softmax(jax.nn.relu(a), axis=1)
    support_set = [jnp.eye(n, dtype=jnp.float32), s]
    for _ in range(2, cheb_k):
        support_set.append(2.0 * s @ support_set[-1] - support_set[-2])
    supports = jnp.stack(support_set, axis=0)
    x_g = jnp.einsum('knm,bmc->bknc', supports, x)
    x_g = jnp.transpose(x_g, (0, 2, 1, 3))
    x_gconv = jnp.einsum('bnki,kio->bno', x_g, cheb_w) + cheb_b
    return x_gconv, a


if __name__ == "__main__":
    # Small, module-consistent shapes
    B, N, C_IN, C_OUT, CHEB_K, EMBED_DIM = 2, 16, 4, 8, 3, 8

    key = jax.random.PRNGKey(0)
    k_x, k_emb, k_lw, k_lb, k_w, k_b = jax.random.split(key, 6)

    x = jax.random.normal(k_x, (B, N, C_IN), dtype=jnp.float32)
    node_emb = jax.random.normal(k_emb, (N, EMBED_DIM), dtype=jnp.float32) * 0.5

    # Module parameter shapes: weights [K, C_in, C_out], bias [C_out],
    # linear1: weight [E, E], bias [E]
    lin_w = jax.random.normal(k_lw, (EMBED_DIM, EMBED_DIM), dtype=jnp.float32) * 0.3
    lin_b = jax.random.normal(k_lb, (EMBED_DIM,), dtype=jnp.float32) * 0.1
    cheb_w = jax.random.normal(k_w, (CHEB_K, C_IN, C_OUT), dtype=jnp.float32) * 0.2
    cheb_b = jax.random.normal(k_b, (C_OUT,), dtype=jnp.float32) * 0.1

    out, A = sagc_forward(x, node_emb, lin_w, lin_b, cheb_w, cheb_b, CHEB_K)
    jax.block_until_ready((out, A))

    ref_out, ref_A = sagc_reference(x, node_emb, lin_w, lin_b, cheb_w, cheb_b, CHEB_K)
    # A is computed fully in f32 -> tight check.
    np.testing.assert_allclose(np.asarray(A), np.asarray(ref_A), rtol=1e-5, atol=1e-5)
    # Output tolerance slightly loosened vs exact f32 because the softmax
    # denominator uses the EUP approximate reciprocal (perf-review item).
    np.testing.assert_allclose(np.asarray(out), np.asarray(ref_out), rtol=1e-2, atol=1e-2)

    print("KERNEL_OK")
</pallas_src>

<mosaic_0001>
module attributes {stable_mosaic.version = 11 : i64} {
  func.func @adj_kernel(%arg0: memref<16x8xf32, #tpu.memory_space<vmem>>, %arg1: memref<8x8xf32, #tpu.memory_space<vmem>>, %arg2: memref<1x8xf32, #tpu.memory_space<vmem>>, %arg3: memref<16x16xf32, #tpu.memory_space<vmem>>, %arg4: memref<16x16xf32, #tpu.memory_space<vmem>>) attributes {dimension_semantics = [], scalar_prefetch = 0 : i64, scratch_operands = 0 : i64, tpu.core_type = #tpu.core_type<tc>} {
    %c0 = arith.constant 0 : index
    %c0_0 = arith.constant 0 : index
    %0 = vector.load %arg0[%c0, %c0_0] : memref<16x8xf32, #tpu.memory_space<vmem>>, vector<16x8xf32>
    %c0_1 = arith.constant 0 : index
    %c0_2 = arith.constant 0 : index
    %1 = vector.load %arg1[%c0_1, %c0_2] : memref<8x8xf32, #tpu.memory_space<vmem>>, vector<8x8xf32>
    %c0_3 = arith.constant 0 : index
    %c0_4 = arith.constant 0 : index
    %2 = vector.load %arg2[%c0_3, %c0_4] : memref<1x8xf32, #tpu.memory_space<vmem>>, vector<1x8xf32>
    %cst = arith.constant dense<0.000000e+00> : vector<16x8xf32>
    %3 = tpu.matmul %0, %1, %cst {dimension_numbers = #tpu.dot_dimension_numbers<[1], [0], [0], [1], [0, 0, 1, 1], [], []>} : vector<16x8xf32>, vector<8x8xf32>, vector<16x8xf32> -> vector<16x8xf32>
    %4 = vector.broadcast %2 : vector<1x8xf32> to vector<16x8xf32>
    %5 = arith.addf %3, %4 : vector<16x8xf32>
    %cst_5 = arith.constant dense<0.000000e+00> : vector<16x16xf32>
    %6 = tpu.matmul %5, %5, %cst_5 {dimension_numbers = #tpu.dot_dimension_numbers<[1], [1], [0], [0], [0, 0, 1, 0], [], []>} : vector<16x8xf32>, vector<16x8xf32>, vector<16x16xf32> -> vector<16x16xf32>
    %c0_6 = arith.constant 0 : index
    %c0_7 = arith.constant 0 : index
    %7 = vector.load %arg3[%c0_6, %c0_7] : memref<16x16xf32, #tpu.memory_space<vmem>>, vector<16x16xf32>
    tpu.vector_store %arg3[%c0_6, %c0_7], %6 {strides = array<i32>} : memref<16x16xf32, #tpu.memory_space<vmem>>, vector<16x16xf32>,
    %cst_8 = arith.constant 0.000000e+00 : f32
    %8 = vector.broadcast %cst_8 : f32 to vector<16x16xf32>
    %9 = arith.maximumf %6, %8 : vector<16x16xf32>
    %cst_9 = arith.constant dense<0xFF800000> : vector<16xf32>
    %10 = vector.multi_reduction <maximumf>, %9, %cst_9 [1] : vector<16x16xf32> to vector<16xf32>
    %11 = vector.shape_cast %10 : vector<16xf32> to vector<16x1xf32>
    %12 = vector.broadcast %11 : vector<16x1xf32> to vector<16x16xf32>
    %13 = arith.subf %9, %12 : vector<16x16xf32>
    %14 = math.exp %13 : vector<16x16xf32>
    %cst_10 = arith.constant dense<0.000000e+00> : vector<16xf32>
    %15 = vector.multi_reduction <add>, %14, %cst_10 [1] : vector<16x16xf32> to vector<16xf32>
    %16 = vector.shape_cast %15 : vector<16xf32> to vector<16x1xf32>
    %17 = tpu.reciprocal %16 {approx = true} : vector<16x1xf32> -> vector<16x1xf32>
    %18 = vector.broadcast %17 : vector<16x1xf32> to vector<16x16xf32>
    %19 = arith.mulf %14, %18 : vector<16x16xf32>
    %c0_11 = arith.constant 0 : index
    %c0_12 = arith.constant 0 : index
    %20 = vector.load %arg4[%c0_11, %c0_12] : memref<16x16xf32, #tpu.memory_space<vmem>>, vector<16x16xf32>
    tpu.vector_store %arg4[%c0_11, %c0_12], %19 {strides = array<i32>} : memref<16x16xf32, #tpu.memory_space<vmem>>, vector<16x16xf32>,
    return
  }
}

</mosaic_0001>

<bundles_post_ra>
// kernel: tpu_custom_call.1
= control target key start
LH: loop header
LB: loop body
LE: loop exit
PB: predicated region body
PF: predicated region fallthrough
CT: control target
= control target key end

     0   :  { %10 = vsyncpa [#allocation3], 0  ;;  %vm28_vm0 = vcmask 64512   ;;  %s429_s0 = inlined_call_operand.vmem [shape: f32[16,8], index: 0, kind: input, shape index: {}]   ;;  %s430_s1 = inlined_call_operand.vmem [shape: f32[8,8], index: 1, kind: input, shape index: {}]   ;;  %s431_s2 = inlined_call_operand.vmem [shape: f32[1,8], index: 2, kind: input, shape index: {}]   ;;  %s432_s3 = inlined_call_operand.hbm [shape: f32[16,16], index: 3, kind: output, shape index: {0}]   ;;  %s433_s4 = inlined_call_operand.hbm [shape: f32[16,16], index: 4, kind: output, shape index: {1}]  }
   0x1   :  { %v20_v0 = vld [vmem:[%s430_s1] sm:$0xff]  ;;  %v19_v2 = vld [vmem:[%s429_s0 + $0x8] sm:$0xff] }
   0x2   :  { %v18_v1 = vld [vmem:[%s429_s0] sm:$0xff]  ;;  %266 = vmatprep.subr.mxu0 %v20_v0 }
   0x3   :  { %268 = vmatprep.mubr.msk.f32.mxu0 %vm28_vm0, %v18_v1 }
   0x4   :  { %11 = vsyncpa [#allocation5], 0  ;;  %267 = vmatpush3.msra.mxu0 %v20_v0  ;;  %v252_v3 = vld [vmem:[%s431_s2] ss:$0 sm:$0xff]  ;;  %vm191_vm2 = vcmask 130048   ;;  %s344_s0 = smov [#allocation2]  }
   0x5   :  { %269 = vmatmul.mubr.msk.f32.vlgmr.msra.gmra.mrb[0].mxu0 %vm28_vm0, %v19_v2  ;;  %vm279_vm1 = vmpackc.low %vm28_vm0, %vm28_vm0  ;;  %s225_s1 = sshll.u32 %s344_s0, 4  ;;  %s226_s1 = int_to_ptr.vmem [resolvable:$true] %s225_s1 }
   0x6   :  { %s296_s2 = scalar_lea.vmem %s226_s1, 256  ;;  %p301_p1 = scmp.lt.s32.totalorder %s226_s1, %s226_s1 }
   0x7   :  { %p297_p0 = scmp.ne.s32.totalorder %s226_s1, %s296_s2  ;;  %p302_p2 = scmp.lt.s32.totalorder %s296_s2, %s296_s2 }
   0x9   :  { %p303_p3 = por %p302_p2, %p301_p1 }
   0xb   :  { %p304_p4 = pnand %p303_p3, %p297_p0 }
  0xd8   :  { %v270_v4 = vpop.f32.mrb[0].mxu0 }
  0xd9   :  { %v107_v5 = vadd.f32 %v270_v4, %v252_v3  ;;  %v101_v6 = vpop.f32.mrb[1].mxu0 }
  0xda   :  { %v102_v7 = vadd.f32 %v252_v3, %v101_v6 }
  0xdc   :  { %275 = vmatprep.mubr.msk.f32.mxu1 %vm28_vm0, %v102_v7  ;;  %v278_v8 = vpack.c.bf16 %v107_v5, %v102_v7 }
  0xde   :  { %280 = vmatprep.subr.msk.bf16.mxu1 %vm279_vm1, %v278_v8 }
  0xdf   :  { %283 = vmatpush3.bf16.xpose.msk.msra.mxu1 %vm279_vm1, %v278_v8 }
  0xe6   :  { %276 = vmatmul.mubr.msk.f32.vlgmr.msra.gmra.mrb[0].mxu1 %vm28_vm0, %v107_v5 }
 0x1b9   :  { %v277_v9 = vpop.f32.mrb[0].mxu1 }
 0x1ba   :  { %193 = vst.msk [vmem:[#allocation2 + $0x8] sm:$0xff] %vm191_vm2, %v277_v9  ;;  %v182_v10 = vpop.f32.mrb[1].mxu1  ;;  %v195_v12 = vmax.f32 %v277_v9, 0.0 }
 0x1bb   :  { %192 = vst.msk [vmem:[#allocation2] sm:$0xff] %vm191_vm2, %v182_v10  ;;  %v194_v11 = vmax.f32 %v182_v10, 0.0 }
 0x1bc   :  { %v199_v14 = vsel %vm191_vm2, %v195_v12, -inf }
 0x1bd   :  { %v196_v13 = vsel %vm191_vm2, %v194_v11, -inf }
 0x1be   :  { %197 = vmax.xlane.f32.xlu0 %v196_v13 }
 0x1c2   :  { %200 = vmax.xlane.f32.xlu0 %v199_v14 }
 0x24b   :  { %v198_v15 = vpop.xlane.xlu0 %197 }
 0x24c   :  { %v202_v16 = vsub.f32 %v194_v11, %v198_v15 }
 0x24e   :  { %v204_v17 = vmul.f32 1.442695, %v202_v16 }
 0x24f   :  { %v201_v18 = vpop.xlane.xlu0 %200 }
 0x250   :  { %288 = vpow2.f32 %v204_v17  ;;  %v203_v19 = vsub.f32 %v195_v12, %v201_v18 }
 0x252   :  { %v206_v20 = vmul.f32 1.442695, %v203_v19 }
 0x254   :  { %290 = vpow2.f32 %v206_v20 }
 0x25a   :  { %v289_v21 = vpop.eup %288 }
 0x25b   :  { %v208_v22 = vsel %vm191_vm2, %v289_v21, 0.0 }
 0x25c   :  { %209 = vadd.xlane.f32.xlu1 %v208_v22 }
 0x25e   :  { %v291_v23 = vpop.eup %290 }
 0x25f   :  { %v211_v24 = vsel %vm191_vm2, %v291_v23, 0.0 }
 0x260   :  { %212 = vadd.xlane.f32.xlu1 %v211_v24 }
 0x261   :  { %307 = shalt.err (!%p304_p4)
}
 0x262   :  { %s308_s25 = scalar_lea.hbm %s432_s3, 256 }
 0x263   :  { %p309_p5 = scmp.ne.s32.totalorder %s432_s3, %s308_s25  ;;  %p312_p6 = scmp.lt.u32.totalorder %s308_s25, %s432_s3 }
 0x265   :  { %p314_p7 = pnand %p312_p6, %p309_p5 }
 0x267   :  { %317 = shalt.err (!%p314_p7)
}
 0x268   :  { %s345_s30 = smov 128   ;;  %s346_s5 = smov 8  }
 0x269   :  { %231 = dma.vmem_to_hbm [thread:$0]  %s226_s1, 256, %s432_s3, [#allocation3], %s345_s30, %s345_s30, %s346_s5  }
 0x26a   :  { %s347_s8 = smov [#allocation4]  }
 0x26b   :  { %s237_s9 = sshll.u32 %s347_s8, 4  ;;  %s238_s9 = int_to_ptr.vmem [resolvable:$true] %s237_s9 }
 0x26c   :  { %s318_s10 = scalar_lea.vmem %s238_s9, 256  ;;  %p323_p9 = scmp.lt.s32.totalorder %s238_s9, %s238_s9 }
 0x26d   :  { %p319_p8 = scmp.ne.s32.totalorder %s238_s9, %s318_s10  ;;  %p324_p10 = scmp.lt.s32.totalorder %s318_s10, %s318_s10 }
 0x26f   :  { %p325_p11 = por %p324_p10, %p323_p9 }
 0x271   :  { %p326_p12 = pnand %p325_p11, %p319_p8 }
 0x2e9   :  { %v210_v25 = vpop.xlane.xlu1 %209 }
 0x2ea   :  { %292 = vrcp.f32 %v210_v25 }
 0x2ed   :  { %v213_v26 = vpop.xlane.xlu1 %212 }
 0x2ee   :  { %294 = vrcp.f32 %v213_v26 }
 0x2f4   :  { %v293_v27 = vpop.eup %292 }
 0x2f5   :  { %v216_v28 = vmul.f32 %v293_v27, %v289_v21 }
 0x2f7   :  { %218 = vst.msk [vmem:[#allocation4] sm:$0xff] %vm191_vm2, %v216_v28 }
 0x2f8   :  { %v295_v29 = vpop.eup %294 }
 0x2f9   :  { %v217_v30 = vmul.f32 %v295_v29, %v291_v23 }
 0x2fb   :  { %219 = vst.msk [vmem:[#allocation4 + $0x8] sm:$0xff] %vm191_vm2, %v217_v30 }
 0x2fc   :  { %329 = shalt.err (!%p326_p12)
}
 0x2fd   :  { %s330_s12 = scalar_lea.hbm %s433_s4, 256 }
 0x2fe   :  { %p331_p13 = scmp.ne.s32.totalorder %s433_s4, %s330_s12  ;;  %p334_p0 = scmp.lt.u32.totalorder %s330_s12, %s433_s4 }
 0x300   :  { %p336_p1 = pnand %p334_p0, %p331_p13 }
 0x302   :  { %339 = shalt.err (!%p336_p1)
}
 0x303   :  { %243 = dma.vmem_to_hbm [thread:$0]  %s238_s9, 256, %s433_s4, [#allocation5], %s345_s30, %s345_s30, %s346_s5  }
 0x304   :  { %340 = dma.done.wait [#allocation3], 256  }
 0x305   :  { %341 = vsyncadd [#allocation3], 4294967040 }
 0x306   :  { %342 = dma.done.wait [#allocation5], 256  }
 0x307   :  { %343 = vsyncadd [#allocation5], 4294967040 }
 0x308   :  { %250 = vsyncpa [#allocation3], 1 }
 0x309   :  { %251 = vsyncpa [#allocation5], 1 }

</bundles_post_ra>
